<compile_context>
chip_gen: v5e
topology: v5e:2x2
jax: 0.10.0
libtpu: 0.0.40
codegen_flags: <defaults>
</compile_context>

<pallas_src>
import functools
import math

import jax
import jax.numpy as jnp
from jax import lax
from jax.experimental import pallas as pl
from jax.experimental.pallas import tpu as pltpu


def _cdiv(a, b):
    return -(-a // b)


_VMEM_LIMIT = 32 * 1024 * 1024


# ----------------------------------------------------------------------------
# Optional single-buffering for grid-constant operands (pl.Buffered(1)).
# Probed once so the script still runs cleanly if pipeline_mode is unsupported.
# ----------------------------------------------------------------------------
def _probe_kernel(x_ref, o_ref):
    o_ref[...] = x_ref[...] + 1.0


def _probe_buffered_one():
    try:
        spec_in = pl.BlockSpec((8, 128), lambda i: (0, 0), pipeline_mode=pl.Buffered(1))
        fn = pl.pallas_call(
            _probe_kernel,
            out_shape=jax.ShapeDtypeStruct((16, 128), jnp.float32),
            grid_spec=pltpu.PrefetchScalarGridSpec(
                num_scalar_prefetch=0,
                grid=(2,),
                in_specs=[spec_in],
                out_specs=pl.BlockSpec((8, 128), lambda i: (i, 0))))
        jax.block_until_ready(fn(jnp.ones((8, 128), jnp.float32)))
        return True
    except Exception:
        return False


_BUFFERED_ONE_OK = _probe_buffered_one()


def _single_buffered_spec(block_shape, index_map):
    """BlockSpec for an operand whose block index is (mostly) grid-constant."""
    if _BUFFERED_ONE_OK:
        return pl.BlockSpec(block_shape, index_map, pipeline_mode=pl.Buffered(1))
    return pl.BlockSpec(block_shape, index_map)


# ----------------------------------------------------------------------------
# Pallas kernel 1: matmul (bf16 operands, f32 accumulate), grid over M tiles,
# optional fused bias epilogue.
# ----------------------------------------------------------------------------
def _matmul_kernel(a_ref, b_ref, o_ref):
    o_ref[...] = jnp.dot(a_ref[...], b_ref[...],
                         preferred_element_type=jnp.float32).astype(o_ref.dtype)


def _matmul_bias_kernel(a_ref, b_ref, bias_ref, o_ref):
    acc = jnp.dot(a_ref[...], b_ref[...], preferred_element_type=jnp.float32)
    o_ref[...] = (acc + bias_ref[...]).astype(o_ref.dtype)


@functools.partial(jax.jit, static_argnames=("out_dtype",))
def pallas_matmul(a, b, bias=None, out_dtype=jnp.bfloat16):
    """a: (M, K) @ b: (K, N) [+ bias (1, N)] -> (M, N). Full-K/full-N blocks."""
    M, K = a.shape
    K2, N = b.shape
    assert K == K2
    a = a.astype(jnp.bfloat16)
    b = b.astype(jnp.bfloat16)
    TM = M if M <= 1024 else 1024
    grid = (_cdiv(M, TM),)
    a_spec = pl.BlockSpec((TM, K), lambda i: (i, 0))
    b_spec = _single_buffered_spec((K, N), lambda i: (0, 0))   # constant across M tiles
    o_spec = pl.BlockSpec((TM, N), lambda i: (i, 0))
    ce = pl.CostEstimate(flops=2 * M * K * N, transcendentals=0,
                         bytes_accessed=2 * (M * K + K * N + M * N))
    cp = pltpu.CompilerParams(dimension_semantics=("parallel",),
                              vmem_limit_bytes=_VMEM_LIMIT)
    if bias is None:
        return pl.pallas_call(
            _matmul_kernel,
            out_shape=jax.ShapeDtypeStruct((M, N), out_dtype),
            grid_spec=pltpu.PrefetchScalarGridSpec(
                num_scalar_prefetch=0, grid=grid,
                in_specs=[a_spec, b_spec], out_specs=o_spec),
            compiler_params=cp, cost_estimate=ce,
        )(a, b)
    bias = bias.reshape(1, N).astype(jnp.float32)
    bias_spec = _single_buffered_spec((1, N), lambda i: (0, 0))
    return pl.pallas_call(
        _matmul_bias_kernel,
        out_shape=jax.ShapeDtypeStruct((M, N), out_dtype),
        grid_spec=pltpu.PrefetchScalarGridSpec(
            num_scalar_prefetch=0, grid=grid,
            in_specs=[a_spec, b_spec, bias_spec], out_specs=o_spec),
        compiler_params=cp, cost_estimate=ce,
    )(a, b, bias)


# ----------------------------------------------------------------------------
# Pallas kernel 2: fused 3x3x3 stride-1 convolution, gridded over z-planes.
# Each grid step sees three padded z-planes (slab streaming) and applies the 27
# taps as shifted (NR, Cin) x (Cin, tco) MXU matmuls accumulated in f32.
# ----------------------------------------------------------------------------
def _conv3x3_plane_kernel(p0_ref, p1_ref, p2_ref, w_ref, o_ref, acc_ref,
                          *, H, W, Wp, NR):
    planes = (p0_ref, p1_ref, p2_ref)
    for dz in range(3):
        pr = planes[dz]
        for dy in range(3):
            t0 = dz * 9 + dy * 3
            base = dy * Wp
            # Sum the three dx taps in one expression so the f32 accumulator in
            # VMEM is read/written once per (dz, dy) group instead of per tap;
            # the very first group initializes it (no zeros pass).
            grp = (jnp.dot(pr[0, 0, pl.ds(base + 0, NR), :], w_ref[t0 + 0],
                           preferred_element_type=jnp.float32)
                   + jnp.dot(pr[0, 0, pl.ds(base + 1, NR), :], w_ref[t0 + 1],
                             preferred_element_type=jnp.float32)
                   + jnp.dot(pr[0, 0, pl.ds(base + 2, NR), :], w_ref[t0 + 2],
                             preferred_element_type=jnp.float32))
            if dz == 0 and dy == 0:
                acc_ref[...] = grp
            else:
                acc_ref[...] += grp
    # Crop fused into the output writes: only valid (y < H, x < W) rows are
    # stored, so there are no padded-coordinate outputs and no XLA crop pass.
    for y in range(H):
        o_ref[0, 0, y] = acc_ref[pl.ds(y * Wp, W), :].astype(o_ref.dtype)


@jax.jit
def _conv3x3_fused(x, w27):
    """x: (N, D, H, W, Cin) bf16; w27: (27, Cin, Cout) bf16 -> (N, D, H, W, Cout)."""
    N, D, H, W, Cin = x.shape
    Cout = w27.shape[2]
    Hp, Wp = H + 2, W + 2
    NR = H * Wp - 2                      # rows computed per plane; covers all valid outputs

    xp = jnp.pad(x.astype(jnp.bfloat16), ((0, 0), (1, 1), (1, 1), (1, 1), (0, 0)))
    xp = xp.reshape(N, D + 2, Hp * Wp, Cin)

    if Cout <= 256:
        tco = Cout
    elif Cout % 256 == 0:
        tco = 256                        # fill the 256-wide MXU on v6e/v7x
    elif Cout % 128 == 0:
        tco = 128
    else:
        tco = Cout
    n_co = Cout // tco

    def plane_spec(dz):
        return pl.BlockSpec((1, 1, Hp * Wp, Cin),
                            lambda n, z, j, dz=dz: (n, z + dz, 0, 0))

    w_spec = _single_buffered_spec((27, Cin, tco), lambda n, z, j: (0, 0, j))

    ce = pl.CostEstimate(
        flops=2 * 27 * N * D * NR * Cin * Cout,
        transcendentals=0,
        bytes_accessed=2 * (3 * N * (D + 2) * Hp * Wp * Cin
                            + 27 * Cin * Cout + N * D * H * W * Cout))
    out = pl.pallas_call(
        functools.partial(_conv3x3_plane_kernel, H=H, W=W, Wp=Wp, NR=NR),
        out_shape=jax.ShapeDtypeStruct((N, D, H, W, Cout), jnp.bfloat16),
        grid_spec=pltpu.PrefetchScalarGridSpec(
            num_scalar_prefetch=0,
            grid=(N, D, n_co),
            in_specs=[plane_spec(0), plane_spec(1), plane_spec(2), w_spec],
            out_specs=pl.BlockSpec((1, 1, H, W, tco),
                                   lambda n, z, j: (n, z, 0, 0, j)),
            scratch_shapes=[pltpu.VMEM((NR, tco), jnp.float32)]),
        compiler_params=pltpu.CompilerParams(
            dimension_semantics=("parallel", "parallel", "arbitrary"),
            vmem_limit_bytes=_VMEM_LIMIT),
        cost_estimate=ce,
    )(xp, xp, xp, w27)
    return out


# im2col path: only for the stride-2 down convs and the 1-channel init conv.
# TODO(synk): replace with a stride-aware fused kernel to avoid the HBM patch matrix.
@functools.partial(jax.jit, static_argnames=("stride",))
def _conv3x3_im2col(x, w27, stride):
    N, D, H, W, Cin = x.shape
    Cout = w27.shape[2]
    xp = jnp.pad(x.astype(jnp.bfloat16), ((0, 0), (1, 1), (1, 1), (1, 1), (0, 0)))
    Do = (D - 1) // stride + 1
    Ho = (H - 1) // stride + 1
    Wo = (W - 1) // stride + 1
    cols = []
    for dz in range(3):
        for dy in range(3):
            for dx in range(3):
                cols.append(lax.slice(
                    xp,
                    (0, dz, dy, dx, 0),
                    (N, dz + stride * (Do - 1) + 1, dy + stride * (Ho - 1) + 1,
                     dx + stride * (Wo - 1) + 1, Cin),
                    (1, stride, stride, stride, 1)))
    patches = jnp.stack(cols, axis=4)                     # (N, Do, Ho, Wo, 27, Cin)
    patches = patches.reshape(N * Do * Ho * Wo, 27 * Cin)
    out = pallas_matmul(patches, w27.reshape(27 * Cin, Cout))
    return out.reshape(N, Do, Ho, Wo, Cout)


def conv3x3(x, w27, stride=1):
    if stride == 1 and x.shape[-1] >= 8:
        return _conv3x3_fused(x, w27)
    return _conv3x3_im2col(x, w27, stride=stride)


# ----------------------------------------------------------------------------
# Pallas kernel 3: fused GroupNorm + ReLU, chunked stats/apply, grid over batch.
# ----------------------------------------------------------------------------
def _gn_relu_kernel(x_ref, gamma_ref, beta_ref, gmat_ref, gmat_t_ref, o_ref,
                    *, inv_count, eps, relu, chunk, nch):
    C = x_ref.shape[2]
    s1 = jnp.zeros((1, C), jnp.float32)
    s2 = jnp.zeros((1, C), jnp.float32)
    # Chunked one-pass stats: only chunk-sized f32 temporaries, never the full block.
    for i in range(nch):
        xc = x_ref[0, pl.ds(i * chunk, chunk), :].astype(jnp.float32)
        s1 = s1 + jnp.sum(xc, axis=0, keepdims=True)
        s2 = s2 + jnp.sum(xc * xc, axis=0, keepdims=True)
    gs1 = jnp.dot(s1, gmat_ref[...], preferred_element_type=jnp.float32)   # (1, G)
    gs2 = jnp.dot(s2, gmat_ref[...], preferred_element_type=jnp.float32)
    mean = gs1 * inv_count
    var = gs2 * inv_count - mean * mean       # f32 sums; inputs are normalized activations
    inv = lax.rsqrt(var + eps)
    mean_c = jnp.dot(mean, gmat_t_ref[...], preferred_element_type=jnp.float32)  # (1, C)
    inv_c = jnp.dot(inv, gmat_t_ref[...], preferred_element_type=jnp.float32)
    a = gamma_ref[...] * inv_c
    b = beta_ref[...] - mean_c * a
    for i in range(nch):
        xc = x_ref[0, pl.ds(i * chunk, chunk), :].astype(jnp.float32)
        y = xc * a + b
        if relu:
            y = jnp.maximum(y, 0.0)
        o_ref[0, pl.ds(i * chunk, chunk), :] = y.astype(o_ref.dtype)


@functools.partial(jax.jit, static_argnames=("num_groups", "eps", "relu"))
def group_norm_relu(x, gamma, beta, num_groups=8, eps=1e-5, relu=True):
    N, D, H, W, C = x.shape
    G = num_groups
    Cg = C // G
    S = D * H * W
    xr = x.reshape(N, S, C)
    chunk = 2048 if (S > 2048 and S % 2048 == 0) else S
    nch = S // chunk
    gmat = jnp.repeat(jnp.eye(G, dtype=jnp.float32), Cg, axis=0)   # (C, G)
    gmat_t = gmat.T                                                # (G, C)
    out = pl.pallas_call(
        functools.partial(_gn_relu_kernel, inv_count=1.0 / float(Cg * S),
                          eps=float(eps), relu=relu, chunk=chunk, nch=nch),
        out_shape=jax.ShapeDtypeStruct((N, S, C), x.dtype),
        grid_spec=pltpu.PrefetchScalarGridSpec(
            num_scalar_prefetch=0,
            grid=(N,),
            in_specs=[pl.BlockSpec((1, S, C), lambda n: (n, 0, 0)),
                      pl.BlockSpec((1, C), lambda n: (0, 0)),
                      pl.BlockSpec((1, C), lambda n: (0, 0)),
                      pl.BlockSpec((C, G), lambda n: (0, 0)),
                      pl.BlockSpec((G, C), lambda n: (0, 0))],
            out_specs=pl.BlockSpec((1, S, C), lambda n: (n, 0, 0))),
        compiler_params=pltpu.CompilerParams(dimension_semantics=("parallel",),
                                             vmem_limit_bytes=_VMEM_LIMIT),
    )(xr, gamma, beta, gmat, gmat_t)
    return out.reshape(N, D, H, W, C)


# ----------------------------------------------------------------------------
# Pallas kernel 4: recurrent slice-wise attention along one axis (bf16, unrolled).
# ----------------------------------------------------------------------------
def _rsa_axis_kernel(theta_ref, g_ref, o_ref, *, scale, T):
    o_ref[0, 0] = g_ref[0, 0]
    for t in range(1, T):                          # fully unrolled serial recurrence
        th = theta_ref[0, t]                       # (S, Cq) bf16
        hp = o_ref[0, t - 1]                       # previous refined slice (bf16)
        logits = lax.dot_general(th, hp, (((1,), (1,)), ((), ())),
                                 preferred_element_type=jnp.float32) * scale
        logits = logits - jnp.max(logits, axis=-1, keepdims=True)
        p = jnp.exp(logits)
        attn = p / jnp.sum(p, axis=-1, keepdims=True)
        upd = lax.dot_general(attn.astype(jnp.bfloat16), hp, (((1,), (0,)), ((), ())),
                              preferred_element_type=jnp.float32)
        o_ref[0, t] = (upd + g_ref[0, t].astype(jnp.float32)).astype(o_ref.dtype)


@jax.jit
def rsa_axis_attention(theta, g):
    N, T, S, Cq = theta.shape
    theta = theta.astype(jnp.bfloat16)
    g = g.astype(jnp.bfloat16)
    return pl.pallas_call(
        functools.partial(_rsa_axis_kernel, scale=1.0 / math.sqrt(Cq), T=T),
        out_shape=jax.ShapeDtypeStruct((N, T, S, Cq), jnp.bfloat16),
        grid_spec=pltpu.PrefetchScalarGridSpec(
            num_scalar_prefetch=0,
            grid=(N,),
            in_specs=[pl.BlockSpec((1, T, S, Cq), lambda n: (n, 0, 0, 0)),
                      pl.BlockSpec((1, T, S, Cq), lambda n: (n, 0, 0, 0))],
            out_specs=pl.BlockSpec((1, T, S, Cq), lambda n: (n, 0, 0, 0))),
        compiler_params=pltpu.CompilerParams(dimension_semantics=("parallel",)),
    )(theta, g)


# ----------------------------------------------------------------------------
# Higher-level blocks (channels-last glue in JAX, heavy math in Pallas)
# ----------------------------------------------------------------------------
@jax.jit
def conv_transpose3d_k2s2(x, w, b):
    """x: (N, D, H, W, Cin); w: (Cin, 8*Cout) bf16 (cols ordered kd,kh,kw,c); b: (Cout,)."""
    N, D, H, W, Cin = x.shape
    Cout = w.shape[1] // 8
    bias8 = jnp.tile(b.astype(jnp.float32), 8).reshape(1, 8 * Cout)
    of = pallas_matmul(x.reshape(N * D * H * W, Cin), w, bias=bias8)   # bias fused
    of = of.reshape(N, D, H, W, 2, 2, 2, Cout)
    # Channel axis stays minor through the interleave -> lane-dense XLA copy.
    # TODO(synk): could be fused into a Pallas scatter kernel to remove this pass.
    of = of.transpose(0, 1, 4, 2, 5, 3, 6, 7)
    return of.reshape(N, 2 * D, 2 * H, 2 * W, Cout)


def conv1x1(x, w, out_dtype=jnp.float32):
    N, D, H, W, C = x.shape
    Cout = w.shape[1]
    y = pallas_matmul(x.reshape(-1, C), w, out_dtype=out_dtype)
    return y.reshape(N, D, H, W, Cout)


def apply_conv_block(x, blk):
    for (w, g, b) in blk:
        x = conv3x3(x, w)
        x = group_norm_relu(x, g, b)
    return x


def apply_down(x, p):
    w, g, b = p
    x = conv3x3(x, w, stride=2)
    return group_norm_relu(x, g, b)


def apply_rsa_block(x, rsa_p):
    N, D, H, W, C = x.shape
    Cq = C // 2
    M = N * D * H * W
    xf = x.reshape(M, C)
    # Fused theta/g projections for all three axes: one wide matmul (bf16).
    proj = pallas_matmul(xf, rsa_p['w_proj']).reshape(N, D, H, W, 6, Cq)
    spatial = (D, H, W)
    hs = []
    for ai in range(3):
        theta = proj[..., 2 * ai, :]
        gval = proj[..., 2 * ai + 1, :]
        T = spatial[ai]
        S = (D * H * W) // T
        th = jnp.moveaxis(theta, 1 + ai, 1).reshape(N, T, S, Cq)
        gv = jnp.moveaxis(gval, 1 + ai, 1).reshape(N, T, S, Cq)
        h = rsa_axis_attention(th, gv)                          # (N, T, S, Cq) bf16
        rest = [spatial[j] for j in range(3) if j != ai]
        h = h.reshape(N, T, rest[0], rest[1], Cq)
        h = jnp.moveaxis(h, 1, 1 + ai)                          # (N, D, H, W, Cq)
        hs.append(h)
    hcat = jnp.concatenate(hs, axis=-1).reshape(M, 3 * Cq)
    y = pallas_matmul(hcat, rsa_p['w_out'])                     # fused output projection
    return x + y.reshape(N, D, H, W, C)


def apply_up(skip, x, p):
    up = conv_transpose3d_k2s2(x, p['w_up'], p['b_up'])
    pads = [(0, 0)]
    for ax in (1, 2, 3):
        diff = skip.shape[ax] - up.shape[ax]
        pads.append((diff // 2, diff - diff // 2))
    pads.append((0, 0))
    up = jnp.pad(up, pads)
    xcat = jnp.concatenate([skip, up], axis=-1)                 # channels-last concat
    return apply_conv_block(xcat, p['conv'])


def rsanet_forward(x_ncdhw, P):
    x = jnp.transpose(x_ncdhw, (0, 2, 3, 4, 1)).astype(jnp.bfloat16)   # -> NDHWC
    x = conv3x3(x, P['init_w'])
    # TODO(synk): Dropout3d(0.2) -> identity (eval mode)
    c1 = apply_conv_block(x, P['conv1'])
    x = apply_down(c1, P['down1'])
    c2 = apply_conv_block(x, P['conv2'])
    x = apply_down(c2, P['down2'])
    c3 = apply_conv_block(x, P['conv3'])
    x = apply_down(c3, P['down3'])
    c4 = apply_conv_block(x, P['conv4'])
    x = apply_down(c4, P['down4'])
    x = apply_conv_block(x, P['center'])
    x = apply_rsa_block(x, P['rsa'])
    x = apply_up(c4, x, P['up4'])
    x = apply_up(c3, x, P['up3'])
    x = apply_up(c2, x, P['up2'])
    x = apply_up(c1, x, P['up1'])
    x = conv3x3(x, P['final_w1'])
    x = conv1x1(x, P['final_w2'], out_dtype=jnp.float32)   # lane-dense padded classes
    x = x[..., :P['n_classes']]
    return jnp.transpose(x, (0, 4, 1, 2, 3))                    # back to NCDHW


# ----------------------------------------------------------------------------
# Deterministic parameter init (synthetic; shapes follow RSANet.__init__).
# Weights are transformed/cast to their kernel layouts (bf16) once, at init.
# ----------------------------------------------------------------------------
def init_params(key, n_classes=2, in_channels=1):
    filters = [32, 64, 128, 256, 512]
    cnt = [0]

    def nk():
        cnt[0] += 1
        return jax.random.fold_in(key, cnt[0])

    def conv_w(cout, cin):
        fan_in = cin * 27
        w = jax.random.normal(nk(), (cout, cin, 3, 3, 3), jnp.float32) * (2.0 / fan_in) ** 0.5
        # (cout, cin, kd, kh, kw) -> (27, cin, cout), tap-major
        return jnp.transpose(w, (2, 3, 4, 1, 0)).reshape(27, cin, cout).astype(jnp.bfloat16)

    def gn(c):
        return jnp.ones((1, c), jnp.float32), jnp.zeros((1, c), jnp.float32)

    def conv_block_p(cin, cout):
        return [(conv_w(cout, cin),) + gn(cout), (conv_w(cout, cout),) + gn(cout)]

    def down_p(c):
        return (conv_w(c, c),) + gn(c)

    def up_p(low, high):
        w = jax.random.normal(nk(), (high, low, 2, 2, 2), jnp.float32) * (1.0 / high) ** 0.5
        # columns ordered (kd, kh, kw, cout) so channels stay on lanes after the matmul
        w = jnp.transpose(w, (0, 2, 3, 4, 1)).reshape(high, 8 * low)
        return {'w_up': w.astype(jnp.bfloat16),
                'b_up': jnp.zeros((low,), jnp.float32),
                'conv': conv_block_p(low * 2, low)}

    def rsa_p(c):
        cq = c // 2
        cols, outs = [], []
        for _ in range(3):
            wt = jax.random.normal(nk(), (c, cq), jnp.float32) * (1.0 / c) ** 0.5
            wg = jax.random.normal(nk(), (c, cq), jnp.float32) * (1.0 / c) ** 0.5
            wo = jax.random.normal(nk(), (cq, c), jnp.float32) * (1.0 / cq) ** 0.5
            cols += [wt, wg]
            outs.append(wo)
        return {'w_proj': jnp.concatenate(cols, axis=1).astype(jnp.bfloat16),
                'w_out': jnp.concatenate(outs, axis=0).astype(jnp.bfloat16)}

    # Final 1x1 weight padded to a 128-lane multiple (lane-dense stores); sliced later.
    n_pad = max(128, _cdiv(n_classes, 128) * 128)
    fw2 = jax.random.normal(nk(), (filters[0], n_classes), jnp.float32) * (2.0 / filters[0]) ** 0.5
    fw2p = jnp.zeros((filters[0], n_pad), jnp.float32).at[:, :n_classes].set(fw2)

    return {
        'init_w': conv_w(filters[0], in_channels),
        'conv1': conv_block_p(filters[0], filters[0]), 'down1': down_p(filters[0]),
        'conv2': conv_block_p(filters[0], filters[1]), 'down2': down_p(filters[1]),
        'conv3': conv_block_p(filters[1], filters[2]), 'down3': down_p(filters[2]),
        'conv4': conv_block_p(filters[2], filters[3]), 'down4': down_p(filters[3]),
        'center': conv_block_p(filters[3], filters[4]),
        'rsa': rsa_p(filters[4]),
        'up4': up_p(filters[3], filters[4]),
        'up3': up_p(filters[2], filters[3]),
        'up2': up_p(filters[1], filters[2]),
        'up1': up_p(filters[0], filters[1]),
        'final_w1': conv_w(filters[0], filters[0]),
        'final_w2': fw2p.astype(jnp.bfloat16),
        'n_classes': n_classes,
    }


if __name__ == "__main__":
    key = jax.random.PRNGKey(0)
    params = init_params(key)
    x = jax.random.normal(jax.random.fold_in(key, 12345), (1, 1, 16, 32, 32), jnp.float32)
    out = rsanet_forward(x, params)
    out = jax.block_until_ready(out)
    assert out.shape == (1, 2, 16, 32, 32), out.shape
    print("KERNEL_OK")
</pallas_src>

<mosaic_0001>
module attributes {stable_mosaic.version = 11 : i64} {
  func.func @_probe_kernel(%arg0: i32, %arg1: memref<8x128xf32, #tpu.memory_space<vmem>>, %arg2: memref<8x128xf32, #tpu.memory_space<vmem>>) attributes {dimension_semantics = [#tpu.dimension_semantics<arbitrary>], iteration_bounds = array<i64: 2>, scalar_prefetch = 0 : i64, scratch_operands = 0 : i64, tpu.core_type = #tpu.core_type<tc>, window_params = [{pipeline_mode = #tpu.pipeline_mode<synchronous>, transform_indices = @transform_0, window_bounds = array<i64: 8, 128>}, {transform_indices = @transform_1, window_bounds = array<i64: 8, 128>}]} {
    %c0 = arith.constant 0 : index
    %c0_0 = arith.constant 0 : index
    %0 = vector.load %arg1[%c0, %c0_0] : memref<8x128xf32, #tpu.memory_space<vmem>>, vector<8x128xf32>
    %cst = arith.constant 1.000000e+00 : f32
    %1 = vector.broadcast %cst : f32 to vector<8x128xf32>
    %2 = arith.addf %0, %1 : vector<8x128xf32>
    %c0_1 = arith.constant 0 : index
    %c0_2 = arith.constant 0 : index
    %3 = vector.load %arg2[%c0_1, %c0_2] : memref<8x128xf32, #tpu.memory_space<vmem>>, vector<8x128xf32>
    tpu.vector_store %arg2[%c0_1, %c0_2], %2 {strides = array<i32>} : memref<8x128xf32, #tpu.memory_space<vmem>>, vector<8x128xf32>,
    return
  }
  func.func @transform_0(%arg0: i32) -> (i32, i32) {
    %c0_i32 = arith.constant 0 : i32
    %c0_i32_0 = arith.constant 0 : i32
    %c0_i32_1 = arith.constant 0 : i32
    return %c0_i32, %c0_i32_0 : i32, i32
  }
  func.func @transform_1(%arg0: i32) -> (i32, i32) {
    %c0_i32 = arith.constant 0 : i32
    %c0_i32_0 = arith.constant 0 : i32
    return %arg0, %c0_i32 : i32, i32
  }
}

module attributes {stable_mosaic.version = 11 : i64} {
  func.func @_matmul_kernel(%arg0: i32, %arg1: memref<1024x27xbf16, #tpu.memory_space<vmem>>, %arg2: memref<27x32xbf16, #tpu.memory_space<vmem>>, %arg3: memref<1024x32xbf16, #tpu.memory_space<vmem>>) attributes {dimension_semantics = [#tpu.dimension_semantics<parallel>], iteration_bounds = array<i64: 16>, scalar_prefetch = 0 : i64, scratch_operands = 0 : i64, tpu.core_type = #tpu.core_type<tc>, window_params = [{transform_indices = @transform_0, window_bounds = array<i64: 1024, 27>}, {pipeline_mode = #tpu.pipeline_mode<synchronous>, transform_indices = @transform_1, window_bounds = array<i64: 27, 32>}, {transform_indices = @transform_2, window_bounds = array<i64: 1024, 32>}]} {
    %c0 = arith.constant 0 : index
    %c0_0 = arith.constant 0 : index
    %0 = vector.load %arg1[%c0, %c0_0] : memref<1024x27xbf16, #tpu.memory_space<vmem>>, vector<1024x27xbf16>
    %c0_1 = arith.constant 0 : index
    %c0_2 = arith.constant 0 : index
    %1 = vector.load %arg2[%c0_1, %c0_2] : memref<27x32xbf16, #tpu.memory_space<vmem>>, vector<27x32xbf16>
    %cst = arith.constant dense<0.000000e+00> : vector<1024x32xf32>
    %2 = tpu.matmul %0, %1, %cst {dimension_numbers = #tpu.dot_dimension_numbers<[1], [0], [0], [1], [0, 0, 1, 1], [], []>} : vector<1024x27xbf16>, vector<27x32xbf16>, vector<1024x32xf32> -> vector<1024x32xf32>
    %3 = arith.truncf %2 : vector<1024x32xf32> to vector<1024x32xbf16>
    %c0_3 = arith.constant 0 : index
    %c0_4 = arith.constant 0 : index
    %4 = vector.load %arg3[%c0_3, %c0_4] : memref<1024x32xbf16, #tpu.memory_space<vmem>>, vector<1024x32xbf16>
    tpu.vector_store %arg3[%c0_3, %c0_4], %3 {strides = array<i32>} : memref<1024x32xbf16, #tpu.memory_space<vmem>>, vector<1024x32xbf16>,
    return
  }
  func.func @transform_0(%arg0: i32) -> (i32, i32) {
    %c0_i32 = arith.constant 0 : i32
    %c0_i32_0 = arith.constant 0 : i32
    return %arg0, %c0_i32 : i32, i32
  }
  func.func @transform_1(%arg0: i32) -> (i32, i32) {
    %c0_i32 = arith.constant 0 : i32
    %c0_i32_0 = arith.constant 0 : i32
    %c0_i32_1 = arith.constant 0 : i32
    return %c0_i32, %c0_i32_0 : i32, i32
  }
  func.func @transform_2(%arg0: i32) -> (i32, i32) {
    %c0_i32 = arith.constant 0 : i32
    %c0_i32_0 = arith.constant 0 : i32
    return %arg0, %c0_i32 : i32, i32
  }
}

</mosaic_0001>

<bundles_post_ra>
// kernel: tpu_custom_call.1
= control target key start
LH: loop header
LB: loop body
LE: loop exit
PB: predicated region body
PF: predicated region fallthrough
CT: control target
= control target key end

     0   :  { %6 = vsyncpa [#allocation3], 0  ;;  %s441_s0 = inlined_call_operand.hbm [shape: f32[8,128], index: 0, kind: input, shape index: {}]   ;;  %s442_s1 = inlined_call_operand.hbm [shape: f32[16,128], index: 1, kind: output, shape index: {}]  }
   0x1   :  { %7 = vsyncpa [#allocation4], 0 }
   0x2   :  { %9 = vsyncpa [#allocation4 + $0x1], 0  ;;  %s357_s6 = smov 0   ;;  %s359_s7 = smov 0  }
   0x3   :  { %s361_s8 = smov 0   ;;  %s363_s9 = smov 0  }
   0x4 LB: > { %s378_s10 = sadd.s32 4294967295, %s344_s9   ;;  %s188_s11 = sadd.s32 4294967294, %s344_s9   ;;  %s344_s9 = sphi %s363_s9, %s448_s9   ;;  %s340_s8 = sphi %s361_s8, %s447_s8   ;;  %s336_s7 = sphi %s359_s7, %s446_s7   ;;  %s332_s6 = sphi %s357_s6, %s445_s6  }
   0x5   : > { %s382_s12 = sadd.s32 1, %s344_s9   ;;  %s43_s13 = sadd.s32 1, %s340_s8 }
   0x6   : > { %s40_s14 = ssub.s32 %s344_s9, %s382_s12  ;;  %p53_p0 = scmp.ne.s32.totalorder %s340_s8, %s336_s7 }
   0x7   : > { %p41_p1 = scmp.eq.s32.totalorder %s40_s14, 0  ;;  %p54_p2 = scmp.eq.s32.totalorder %s378_s10, 1 }
   0x8   : > { %p59_p3 = scmp.ne.s32.totalorder %s336_s7, %s332_s6  ;;  %p60_p4 = scmp.eq.s32.totalorder %s188_s11, 1 }
   0x9   : > { %s393_s15 = scalar_select %p41_p1, %s340_s8, %s43_s13  }
   0xa   : > { %p395_p5 = por %p54_p2, %p53_p0  ;;  %p399_p6 = por %p60_p4, %p59_p3 }
   0xb   : > { %p189_p7 = scmp.ge.s32.totalorder %s344_s9, 1  ;;  %p67_p8 = scmp.lt.s32.totalorder %s344_s9, 3 }
   0xc   : > { %p212_p9 = scmp.eq.s32.totalorder %s378_s10, 0  ;;  %s79_s20 = sshll.u32 %s441_s0, 4  ;;  %s80_s20 = int_to_ptr.hbm [resolvable:$true] %s79_s20 }
   0xd   : > { %p68_p10 = pnand %p189_p7, %p67_p8  ;;  %s346_s21 = smov [#allocation2]  }
   0xe   : > { %s81_s22 = sshll.u32 %s346_s21, 4  ;;  %s82_s22 = int_to_ptr.vmem [resolvable:$true] %s81_s22 }
   0xf   : > { %p204_p11 = pneg %p68_p10  ;;  %94 = sbr.rel (%p68_p10) target bundleno = 37 (0x25), region = 24 }
  0x11   : > { %p205_p12 = pnand %p212_p9, %p204_p11 }
  0x13   : > { %207 = dma.hbm_to_vmem [thread:$0]  (!%p205_p12), %s80_s20, 128, %s82_s22, [#allocation3]  }
  0x14   : > { %323 = dma.done.wait (%p212_p9), [#allocation3], 128  }
  0x15   : > { %325 = vsyncadd (%p212_p9), [#allocation3], 4294967168  ;;  %s107_s23 = sand.u32 1, %s336_s7   ;;  %s195_s24 = sshll.u32 %s378_s10, 3  ;;  %v110_v0 = vld [vmem:[#allocation2] sm:$0xff] }
  0x16   : > { %s193_s25 = sshll.u32 %s107_s23, 3  ;;  %s124_s28 = scalar_lea.hbm %s442_s1, %s195_s24  ;;  %v111_v1 = vadd.f32 1.0, %v110_v0 }
  0x17   : > { %s109_s29 = scalar_lea.vmem [#allocation5], %s193_s25  ;;  %s128_s2 = sshll.u32 %s124_s28, 4  ;;  %s129_s2 = int_to_ptr.hbm [resolvable:$true] %s128_s2 }
  0x18   : > { %s126_s30 = sshll.u32 %s109_s29, 4  ;;  %112 = vst [vmem:[%s109_s29] sm:$0xff] %v111_v1  ;;  %s114_s3 = scalar_lea.sflag [#allocation4], %s107_s23  ;;  %s127_s30 = int_to_ptr.vmem [resolvable:$true] %s126_s30 }
  0x19   : > { %s292_s4 = sshra.s32 %s129_s2, 4  ;;  %s298_s13 = scalar_lea.hbm %s442_s1, 16  ;;  %s293_s4 = int_to_ptr.hbm [resolvable:$true] %s292_s4 }
  0x1a   : > { %s294_s5 = scalar_lea.hbm %s293_s4, 8  ;;  %p299_p2 = scmp.lt.s32.totalorder %s293_s4, %s442_s1 }
  0x1b   : > { %p295_p13 = scmp.ne.s32.totalorder %s293_s4, %s294_s5  ;;  %p300_p3 = scmp.lt.s32.totalorder %s298_s13, %s294_s5 }
  0x1d   : > { %p296_p0 = pnand %p295_p13, %p395_p5  ;;  %p301_p4 = por %p300_p3, %p299_p2 }
  0x1f   : > { %p297_p1 = pneg %p296_p0 }
  0x21   : > { %p302_p7 = pnand %p301_p4, %p297_p1 }
  0x23   : > { %305 = shalt.err (!%p302_p7)
}
  0x24   : > { %202 = dma.vmem_to_hbm [thread:$0]  (%p395_p5), %s127_s30, 128, %s129_s2, %s114_s3  }
  0x25 PF: > { %p214_p8 = scmp.ge.s32.totalorder %s344_s9, 2  ;;  %s140_s19 = sand.u32 1, %s332_s6  }
  0x26   : > { %s141_s20 = scalar_lea.sflag [#allocation4], %s140_s19 }
  0x27   : > { %p209_p9 = pnand %p214_p8, %p399_p6 }
  0x29   : > { %p210_p10 = pneg %p209_p9 }
  0x2b   : > { %327 = dma.done.wait (%p210_p10), %s141_s20, 128  }
  0x2c   : > { %329 = vsyncadd (%p210_p10), %s141_s20, 4294967168  ;;  %p12_p11 = scmp.ge.s32.totalorder %s382_s12, 4   ;;  %s445_s6 = smov %s336_s7 }
  0x2d   : > { %s446_s7 = smov %s340_s8  ;;  %s447_s8 = smov %s393_s15 }
  0x2e   : > { %s448_s9 = smov %s382_s12  ;;  %14 = sbr.rel (!%p12_p11) target bundleno = 4 (0x4), region = 61 }
  0x33   :  { %147 = vsyncpa [#allocation3], 1 }
  0x34   :  { %149 = vsyncpa [#allocation3 + $0x1], 1 }
  0x35   :  { %150 = vsyncpa [#allocation4], 1 }
  0x36   :  { %152 = vsyncpa [#allocation4 + $0x1], 1 }

// kernel: pallas_matmul.1
= control target key start
LH: loop header
LB: loop body
LE: loop exit
PB: predicated region body
PF: predicated region fallthrough
CT: control target
= control target key end

     0   :  { %s1897_s9 = smov 0   ;;  %s2318_s0 = inlined_call_operand.vmem [shape: bf16[16384,27], index: 0, kind: input, shape index: {}]   ;;  %s2319_s1 = inlined_call_operand.vmem [shape: bf16[27,32], index: 1, kind: input, shape index: {}]   ;;  %s2320_s2 = inlined_call_operand.vmem [shape: bf16[16384,32], index: 2, kind: output, shape index: {}]  }
   0x1 LB: > { %s1453_s10 = sadd.s32 4294967295, %s1879_s9   ;;  %p1457_p0 = scmp.ge.s32.totalorder %s1879_s9, 1  ;;  %s1879_s9 = sphi %s1897_s9, %s12_s9  }
   0x2   : > { %p113_p1 = scmp.lt.s32.totalorder %s1879_s9, 17 }
   0x4   : > { %p114_p2 = pnand %p1457_p0, %p113_p1 }
   0x5   : > { %s1458_s15 = sshll.u32 (!%p114_p2), %s1453_s10, 7 }
   0x6   : > { %117 = sbr.rel (%p114_p2) target bundleno = 409 (0x199), region = 28  ;;  %p136_p3 = scmp.lt.s32.totalorder (!%p114_p2), %s1458_s15, 2047 }
   0xb   : > { %v1724_v0 = vld [vmem:[%s2319_s1 + $0x8] sm:$0xf]  ;;  %v1857_v1 = vld [vmem:[%s2319_s1 + $0x8] sm:$0x30]  ;;  %vm804_vm0 = vcmask 1044480   ;;  %vm805_vm1 = vcmask 1045504  }
   0xc   : > { %v1725_v2 = vor.u32 %v1857_v1, %v1724_v0  ;;  %v1881_v3 = vmov 65535   ;;  %s2322_s15 = smov (!%p136_p3, %s1458_s15), 2047  ;;  %v1856_v7 = vld [vmem:[%s2319_s1] sm:$0xff]  ;;  %vm611_vm2 = vcmask 220160   ;;  %vm1268_vm3 = vcmask 257024  }
   0xd   : > { %v806_v4 = vsel %vm804_vm0, 4294967295, %v1881_v3  ;;  %s1459_s18 = sshll.u32 %s2322_s15, 2 }
   0xe   : > { %v807_v5 = vsel %vm805_vm1, %v806_v4, 0  ;;  %s1922_s21 = scalar_lea.vmem %s2318_s0, %s1459_s18  ;;  %s1995_s24 = scalar_lea.vmem %s2320_s2, %s1459_s18 }
   0xf   : > { %v809_v6 = vand.u32 %v1725_v2, %v807_v5  ;;  %v1792_v8 = vld [vmem:[%s1922_s21] sm:$0xff]  ;;  %v1793_v12 = vld [vmem:[%s1922_s21 + $0x8] sm:$0xff]  ;;  %v1794_v16 = vld [vmem:[%s1922_s21 + $0x10] sm:$0xff] }
  0x10   : > { %v1808_v9 = vld [vmem:[%s1922_s21 + $0x80] sm:$0xff]  ;;  %v1809_v13 = vld [vmem:[%s1922_s21 + $0x88] sm:$0xff]  ;;  %v1810_v17 = vld [vmem:[%s1922_s21 + $0x90] sm:$0xff] }
  0x11   : > { %817 = vmatpush.bf16.msra.mxu0 %v809_v6  ;;  %1858 = vmatpush.bf16.msra.mxu1 %v809_v6  ;;  %v1824_v10 = vld [vmem:[%s1922_s21 + $0x100] sm:$0xff]  ;;  %v1825_v14 = vld [vmem:[%s1922_s21 + $0x108] sm:$0xff]  ;;  %v1826_v18 = vld [vmem:[%s1922_s21 + $0x110] sm:$0xff] }
  0x12   : > { %1859 = vmatpush.bf16.msra.mxu2 %v809_v6  ;;  %1860 = vmatpush.bf16.msra.mxu3 %v809_v6  ;;  %v1840_v11 = vld [vmem:[%s1922_s21 + $0x180] sm:$0xff]  ;;  %v1841_v15 = vld [vmem:[%s1922_s21 + $0x188] sm:$0xff]  ;;  %v1842_v19 = vld [vmem:[%s1922_s21 + $0x190] sm:$0xff] }
  0x13   : > { %v1795_v20 = vld [vmem:[%s1922_s21 + $0x18] sm:$0xff]  ;;  %v1796_v24 = vld [vmem:[%s1922_s21 + $0x20] sm:$0xff]  ;;  %v1797_v28 = vld [vmem:[%s1922_s21 + $0x28] sm:$0xff] }
  0x14   : > { %v1811_v21 = vld [vmem:[%s1922_s21 + $0x98] sm:$0xff]  ;;  %v1812_v25 = vld [vmem:[%s1922_s21 + $0xa0] sm:$0xff]  ;;  %v1813_v29 = vld [vmem:[%s1922_s21 + $0xa8] sm:$0xff] }
  0x15   : > { %818 = vmatpush.bf16.msra.mxu0 %v1856_v7  ;;  %1861 = vmatpush.bf16.msra.mxu1 %v1856_v7  ;;  %v1827_v22 = vld [vmem:[%s1922_s21 + $0x118] sm:$0xff]  ;;  %v1828_v26 = vld [vmem:[%s1922_s21 + $0x120] sm:$0xff]  ;;  %v1829_v30 = vld [vmem:[%s1922_s21 + $0x128] sm:$0xff] }
  0x16   : > { %1862 = vmatpush.bf16.msra.mxu2 %v1856_v7  ;;  %1863 = vmatpush.bf16.msra.mxu3 %v1856_v7  ;;  %v1843_v23 = vld [vmem:[%s1922_s21 + $0x198] sm:$0xff]  ;;  %v1844_v27 = vld [vmem:[%s1922_s21 + $0x1a0] sm:$0xff]  ;;  %v1845_v31 = vld [vmem:[%s1922_s21 + $0x1a8] sm:$0xff] }
  0x17   : > { %v1798_v32 = vld [vmem:[%s1922_s21 + $0x30] sm:$0xff]  ;;  %v1799_v36 = vld [vmem:[%s1922_s21 + $0x38] sm:$0xff]  ;;  %v1800_v40 = vld [vmem:[%s1922_s21 + $0x40] sm:$0xff] }
  0x18   : > { %1726 = vmatmul.msk.bf16.vlgmr.msra.gmra.mxu0 %vm611_vm2, %v1792_v8  ;;  %1742 = vmatmul.msk.bf16.vlgmr.msra.gmra.mxu1 %vm611_vm2, %v1808_v9  ;;  %v1814_v33 = vld [vmem:[%s1922_s21 + $0xb0] sm:$0xff]  ;;  %v1815_v37 = vld [vmem:[%s1922_s21 + $0xb8] sm:$0xff]  ;;  %v1816_v41 = vld [vmem:[%s1922_s21 + $0xc0] sm:$0xff] }
  0x19   : > { %1758 = vmatmul.msk.bf16.vlgmr.msra.gmra.mxu2 %vm611_vm2, %v1824_v10  ;;  %1774 = vmatmul.msk.bf16.vlgmr.msra.gmra.mxu3 %vm611_vm2, %v1840_v11  ;;  %v1830_v34 = vld [vmem:[%s1922_s21 + $0x130] sm:$0xff]  ;;  %v1831_v38 = vld [vmem:[%s1922_s21 + $0x138] sm:$0xff]  ;;  %v1832_v44 = vld [vmem:[%s1922_s21 + $0x140] sm:$0xff] }
  0x1a   : > { %v1846_v35 = vld [vmem:[%s1922_s21 + $0x1b0] sm:$0xff]  ;;  %v1847_v39 = vld [vmem:[%s1922_s21 + $0x1b8] sm:$0xff]  ;;  %v1848_v45 = vld [vmem:[%s1922_s21 + $0x1c0] sm:$0xff] }
  0x1b   : > { %v1801_v58 = vld [vmem:[%s1922_s21 + $0x48] sm:$0xff] }
  0x1c   : > { %v1817_v59 = vld [vmem:[%s1922_s21 + $0xc8] sm:$0xff] }
  0x1d   : > { %v1833_v0 = vld [vmem:[%s1922_s21 + $0x148] sm:$0xff] }
  0x1e   : > { %v1849_v1 = vld [vmem:[%s1922_s21 + $0x1c8] sm:$0xff] }
  0x28   : > { %1727 = vmatmul.msk.bf16.gmra.mxu0 %vm611_vm2, %v1793_v12  ;;  %1743 = vmatmul.msk.bf16.gmra.mxu1 %vm611_vm2, %v1809_v13 }
  0x29   : > { %1759 = vmatmul.msk.bf16.gmra.mxu2 %vm611_vm2, %v1825_v14  ;;  %1775 = vmatmul.msk.bf16.gmra.mxu3 %vm611_vm2, %v1841_v15  ;;  %v1802_v14 = vld [vmem:[%s1922_s21 + $0x50] sm:$0xff] }
  0x2a   : > { %v1818_v15 = vld [vmem:[%s1922_s21 + $0xd0] sm:$0xff] }
  0x38   : > { %1728 = vmatmul.msk.bf16.gmra.mxu0 %vm611_vm2, %v1794_v16  ;;  %1744 = vmatmul.msk.bf16.gmra.mxu1 %vm611_vm2, %v1810_v17 }
  0x39   : > { %1760 = vmatmul.msk.bf16.gmra.mxu2 %vm611_vm2, %v1826_v18  ;;  %1776 = vmatmul.msk.bf16.gmra.mxu3 %vm611_vm2, %v1842_v19 }
  0x48   : > { %1729 = vmatmul.msk.bf16.gmra.mxu0 %vm611_vm2, %v1795_v20  ;;  %1745 = vmatmul.msk.bf16.gmra.mxu1 %vm611_vm2, %v1811_v21  ;;  %v1834_v20 = vld [vmem:[%s1922_s21 + $0x150] sm:$0xff] }
  0x49   : > { %1761 = vmatmul.msk.bf16.gmra.mxu2 %vm611_vm2, %v1827_v22  ;;  %1777 = vmatmul.msk.bf16.gmra.mxu3 %vm611_vm2, %v1843_v23  ;;  %v1850_v21 = vld [vmem:[%s1922_s21 + $0x1d0] sm:$0xff] }
  0x58   : > { %1730 = vmatmul.msk.bf16.gmra.mxu0 %vm611_vm2, %v1796_v24  ;;  %1746 = vmatmul.msk.bf16.gmra.mxu1 %vm611_vm2, %v1812_v25 }
  0x59   : > { %1762 = vmatmul.msk.bf16.gmra.mxu2 %vm611_vm2, %v1828_v26  ;;  %1778 = vmatmul.msk.bf16.gmra.mxu3 %vm611_vm2, %v1844_v27 }
  0x68   : > { %1731 = vmatmul.msk.bf16.gmra.mxu0 %vm611_vm2, %v1797_v28  ;;  %1747 = vmatmul.msk.bf16.gmra.mxu1 %vm611_vm2, %v1813_v29 }
  0x69   : > { %1763 = vmatmul.msk.bf16.gmra.mxu2 %vm611_vm2, %v1829_v30  ;;  %1779 = vmatmul.msk.bf16.gmra.mxu3 %vm611_vm2, %v1845_v31 }
  0x78   : > { %1732 = vmatmul.msk.bf16.gmra.mxu0 %vm611_vm2, %v1798_v32  ;;  %1748 = vmatmul.msk.bf16.gmra.mxu1 %vm611_vm2, %v1814_v33 }
  0x79   : > { %1764 = vmatmul.msk.bf16.gmra.mxu2 %vm611_vm2, %v1830_v34  ;;  %1780 = vmatmul.msk.bf16.gmra.mxu3 %vm611_vm2, %v1846_v35  ;;  %v1803_v34 = vld [vmem:[%s1922_s21 + $0x58] sm:$0xff] }
  0x7a   : > { %v1819_v35 = vld [vmem:[%s1922_s21 + $0xd8] sm:$0xff] }
  0x88   : > { %1733 = vmatmul.msk.bf16.gmra.mxu0 %vm611_vm2, %v1799_v36  ;;  %1749 = vmatmul.msk.bf16.gmra.mxu1 %vm611_vm2, %v1815_v37 }
  0x89   : > { %1765 = vmatmul.msk.bf16.gmra.mxu2 %vm611_vm2, %v1831_v38  ;;  %1781 = vmatmul.msk.bf16.gmra.mxu3 %vm611_vm2, %v1847_v39 }
  0x95   : > { %v820_v42 = vpop.f32.mrf.mxu0  ;;  %v900_v43 = vpop.f32.mrf.mxu1 }
  0x96   : > { %v1140_v46 = vpack.c.bf16 %v820_v42, %v820_v42  ;;  %v1172_v47 = vpack.c.bf16 %v900_v43, %v900_v43 }
  0x98   : > { %1269 = vst.msk [vmem:[%s1995_s24] sm:$0xf] %vm1268_vm3, %v1140_v46  ;;  %1734 = vmatmul.msk.bf16.gmra.mxu0 %vm611_vm2, %v1800_v40  ;;  %1750 = vmatmul.msk.bf16.gmra.mxu1 %vm611_vm2, %v1816_v41  ;;  %v1835_v40 = vld [vmem:[%s1922_s21 + $0x158] sm:$0xff] }
  0x99   : > { %1301 = vst.msk [vmem:[%s1995_s24 + $0x80] sm:$0xf] %vm1268_vm3, %v1172_v47  ;;  %1766 = vmatmul.msk.bf16.gmra.mxu2 %vm611_vm2, %v1832_v44  ;;  %1782 = vmatmul.msk.bf16.gmra.mxu3 %vm611_vm2, %v1848_v45  ;;  %v1851_v41 = vld [vmem:[%s1922_s21 + $0x1d8] sm:$0xff] }
  0x9c   : > { %v980_v48 = vpop.f32.mrf.mxu2  ;;  %v1060_v49 = vpop.f32.mrf.mxu3 }
  0x9d   : > { %v1204_v50 = vpack.c.bf16 %v980_v48, %v980_v48  ;;  %v1236_v51 = vpack.c.bf16 %v1060_v49, %v1060_v49  ;;  %v822_v52 = vpop.f32.mrf.mxu0  ;;  %v902_v53 = vpop.f32.mrf.mxu1 }
  0x9e   : > { %v1141_v54 = vpack.c.bf16 %v822_v52, %v822_v52  ;;  %v1173_v55 = vpack.c.bf16 %v902_v53, %v902_v53 }
  0x9f   : > { %1333 = vst.msk [vmem:[%s1995_s24 + $0x100] sm:$0xf] %vm1268_vm3, %v1204_v50 }
  0xa0   : > { %1365 = vst.msk [vmem:[%s1995_s24 + $0x180] sm:$0xf] %vm1268_vm3, %v1236_v51 }
  0xa1   : > { %1270 = vst.msk [vmem:[%s1995_s24 + $0x4] sm:$0xf] %vm1268_vm3, %v1141_v54  ;;  %v1804_v54 = vld [vmem:[%s1922_s21 + $0x60] sm:$0xff] }
  0xa2   : > { %1302 = vst.msk [vmem:[%s1995_s24 + $0x84] sm:$0xf] %vm1268_vm3, %v1173_v55  ;;  %v1820_v55 = vld [vmem:[%s1922_s21 + $0xe0] sm:$0xff] }
  0xa4   : > { %v982_v56 = vpop.f32.mrf.mxu2  ;;  %v1062_v57 = vpop.f32.mrf.mxu3 }
  0xa5   : > { %v1205_v60 = vpack.c.bf16 %v982_v56, %v982_v56  ;;  %v1237_v61 = vpack.c.bf16 %v1062_v57, %v1062_v57  ;;  %v825_v62 = vpop.f32.mrf.mxu0  ;;  %v905_v63 = vpop.f32.mrf.mxu1 }
  0xa6   : > { %v1142_v2 = vpack.c.bf16 %v825_v62, %v825_v62  ;;  %v1174_v3 = vpack.c.bf16 %v905_v63, %v905_v63 }
  0xa7   : > { %1334 = vst.msk [vmem:[%s1995_s24 + $0x104] sm:$0xf] %vm1268_vm3, %v1205_v60  ;;  %v1836_v60 = vld [vmem:[%s1922_s21 + $0x160] sm:$0xff] }
  0xa8   : > { %1366 = vst.msk [vmem:[%s1995_s24 + $0x184] sm:$0xf] %vm1268_vm3, %v1237_v61  ;;  %1735 = vmatmul.msk.bf16.gmra.mxu0 %vm611_vm2, %v1801_v58  ;;  %1751 = vmatmul.msk.bf16.gmra.mxu1 %vm611_vm2, %v1817_v59  ;;  %v1852_v61 = vld [vmem:[%s1922_s21 + $0x1e0] sm:$0xff] }
  0xa9   : > { %1271 = vst.msk [vmem:[%s1995_s24 + $0x8] sm:$0xf] %vm1268_vm3, %v1142_v2  ;;  %1767 = vmatmul.msk.bf16.gmra.mxu2 %vm611_vm2, %v1833_v0  ;;  %1783 = vmatmul.msk.bf16.gmra.mxu3 %vm611_vm2, %v1849_v1 }
  0xaa   : > { %1303 = vst.msk [vmem:[%s1995_s24 + $0x88] sm:$0xf] %vm1268_vm3, %v1174_v3 }
  0xac   : > { %v985_v4 = vpop.f32.mrf.mxu2  ;;  %v1065_v5 = vpop.f32.mrf.mxu3 }
  0xad   : > { %v1206_v6 = vpack.c.bf16 %v985_v4, %v985_v4  ;;  %v1238_v7 = vpack.c.bf16 %v1065_v5, %v1065_v5  ;;  %v827_v8 = vpop.f32.mrf.mxu0  ;;  %v907_v9 = vpop.f32.mrf.mxu1 }
  0xae   : > { %v1143_v10 = vpack.c.bf16 %v827_v8, %v827_v8  ;;  %v1175_v11 = vpack.c.bf16 %v907_v9, %v907_v9 }
  0xaf   : > { %1335 = vst.msk [vmem:[%s1995_s24 + $0x108] sm:$0xf] %vm1268_vm3, %v1206_v6 }
  0xb0   : > { %1367 = vst.msk [vmem:[%s1995_s24 + $0x188] sm:$0xf] %vm1268_vm3, %v1238_v7 }
  0xb1   : > { %1272 = vst.msk [vmem:[%s1995_s24 + $0xc] sm:$0xf] %vm1268_vm3, %v1143_v10  ;;  %v1805_v10 = vld [vmem:[%s1922_s21 + $0x68] sm:$0xff] }
  0xb2   : > { %1304 = vst.msk [vmem:[%s1995_s24 + $0x8c] sm:$0xf] %vm1268_vm3, %v1175_v11  ;;  %v1821_v11 = vld [vmem:[%s1922_s21 + $0xe8] sm:$0xff] }
  0xb4   : > { %v987_v12 = vpop.f32.mrf.mxu2  ;;  %v1067_v13 = vpop.f32.mrf.mxu3 }
  0xb5   : > { %v1207_v16 = vpack.c.bf16 %v987_v12, %v987_v12  ;;  %v1239_v17 = vpack.c.bf16 %v1067_v13, %v1067_v13  ;;  %v830_v18 = vpop.f32.mrf.mxu0  ;;  %v910_v19 = vpop.f32.mrf.mxu1 }
  0xb6   : > { %v1144_v22 = vpack.c.bf16 %v830_v18, %v830_v18  ;;  %v1176_v23 = vpack.c.bf16 %v910_v19, %v910_v19 }
  0xb7   : > { %1336 = vst.msk [vmem:[%s1995_s24 + $0x10c] sm:$0xf] %vm1268_vm3, %v1207_v16  ;;  %v1837_v16 = vld [vmem:[%s1922_s21 + $0x168] sm:$0xff] }
  0xb8   : > { %1368 = vst.msk [vmem:[%s1995_s24 + $0x18c] sm:$0xf] %vm1268_vm3, %v1239_v17  ;;  %1736 = vmatmul.msk.bf16.gmra.mxu0 %vm611_vm2, %v1802_v14  ;;  %1752 = vmatmul.msk.bf16.gmra.mxu1 %vm611_vm2, %v1818_v15  ;;  %v1853_v17 = vld [vmem:[%s1922_s21 + $0x1e8] sm:$0xff] }
  0xb9   : > { %1273 = vst.msk [vmem:[%s1995_s24 + $0x10] sm:$0xf] %vm1268_vm3, %v1144_v22  ;;  %1768 = vmatmul.msk.bf16.gmra.mxu2 %vm611_vm2, %v1834_v20  ;;  %1784 = vmatmul.msk.bf16.gmra.mxu3 %vm611_vm2, %v1850_v21 }
  0xba   : > { %1305 = vst.msk [vmem:[%s1995_s24 + $0x90] sm:$0xf] %vm1268_vm3, %v1176_v23 }
  0xbc   : > { %v990_v24 = vpop.f32.mrf.mxu2  ;;  %v1070_v25 = vpop.f32.mrf.mxu3 }
  0xbd   : > { %v1208_v26 = vpack.c.bf16 %v990_v24, %v990_v24  ;;  %v1240_v27 = vpack.c.bf16 %v1070_v25, %v1070_v25  ;;  %v832_v28 = vpop.f32.mrf.mxu0  ;;  %v912_v29 = vpop.f32.mrf.mxu1 }
  0xbe   : > { %v1145_v30 = vpack.c.bf16 %v832_v28, %v832_v28  ;;  %v1177_v31 = vpack.c.bf16 %v912_v29, %v912_v29 }
  0xbf   : > { %1337 = vst.msk [vmem:[%s1995_s24 + $0x110] sm:$0xf] %vm1268_vm3, %v1208_v26 }
  0xc0   : > { %1369 = vst.msk [vmem:[%s1995_s24 + $0x190] sm:$0xf] %vm1268_vm3, %v1240_v27 }
  0xc1   : > { %1274 = vst.msk [vmem:[%s1995_s24 + $0x14] sm:$0xf] %vm1268_vm3, %v1145_v30  ;;  %v1806_v30 = vld [vmem:[%s1922_s21 + $0x70] sm:$0xff] }
  0xc2   : > { %1306 = vst.msk [vmem:[%s1995_s24 + $0x94] sm:$0xf] %vm1268_vm3, %v1177_v31  ;;  %v1822_v31 = vld [vmem:[%s1922_s21 + $0xf0] sm:$0xff] }
  0xc4   : > { %v992_v32 = vpop.f32.mrf.mxu2  ;;  %v1072_v33 = vpop.f32.mrf.mxu3 }
  0xc5   : > { %v1209_v36 = vpack.c.bf16 %v992_v32, %v992_v32  ;;  %v1241_v37 = vpack.c.bf16 %v1072_v33, %v1072_v33  ;;  %v835_v38 = vpop.f32.mrf.mxu0  ;;  %v915_v39 = vpop.f32.mrf.mxu1 }
  0xc6   : > { %v1146_v42 = vpack.c.bf16 %v835_v38, %v835_v38  ;;  %v1178_v43 = vpack.c.bf16 %v915_v39, %v915_v39 }
  0xc7   : > { %1338 = vst.msk [vmem:[%s1995_s24 + $0x114] sm:$0xf] %vm1268_vm3, %v1209_v36  ;;  %v1838_v36 = vld [vmem:[%s1922_s21 + $0x170] sm:$0xff] }
  0xc8   : > { %1370 = vst.msk [vmem:[%s1995_s24 + $0x194] sm:$0xf] %vm1268_vm3, %v1241_v37  ;;  %1737 = vmatmul.msk.bf16.gmra.mxu0 %vm611_vm2, %v1803_v34  ;;  %1753 = vmatmul.msk.bf16.gmra.mxu1 %vm611_vm2, %v1819_v35  ;;  %v1854_v37 = vld [vmem:[%s1922_s21 + $0x1f0] sm:$0xff] }
  0xc9   : > { %1275 = vst.msk [vmem:[%s1995_s24 + $0x18] sm:$0xf] %vm1268_vm3, %v1146_v42  ;;  %1769 = vmatmul.msk.bf16.gmra.mxu2 %vm611_vm2, %v1835_v40  ;;  %1785 = vmatmul.msk.bf16.gmra.mxu3 %vm611_vm2, %v1851_v41 }
  0xca   : > { %1307 = vst.msk [vmem:[%s1995_s24 + $0x98] sm:$0xf] %vm1268_vm3, %v1178_v43 }
  0xcc   : > { %v995_v44 = vpop.f32.mrf.mxu2  ;;  %v1075_v45 = vpop.f32.mrf.mxu3 }
  0xcd   : > { %v1210_v46 = vpack.c.bf16 %v995_v44, %v995_v44  ;;  %v1242_v47 = vpack.c.bf16 %v1075_v45, %v1075_v45  ;;  %v837_v48 = vpop.f32.mrf.mxu0  ;;  %v917_v49 = vpop.f32.mrf.mxu1 }
  0xce   : > { %v1147_v50 = vpack.c.bf16 %v837_v48, %v837_v48  ;;  %v1179_v51 = vpack.c.bf16 %v917_v49, %v917_v49 }
  0xcf   : > { %1339 = vst.msk [vmem:[%s1995_s24 + $0x118] sm:$0xf] %vm1268_vm3, %v1210_v46 }
  0xd0   : > { %1371 = vst.msk [vmem:[%s1995_s24 + $0x198] sm:$0xf] %vm1268_vm3, %v1242_v47 }
  0xd1   : > { %1276 = vst.msk [vmem:[%s1995_s24 + $0x1c] sm:$0xf] %vm1268_vm3, %v1147_v50  ;;  %v1807_v50 = vld [vmem:[%s1922_s21 + $0x78] sm:$0xff] }
  0xd2   : > { %1308 = vst.msk [vmem:[%s1995_s24 + $0x9c] sm:$0xf] %vm1268_vm3, %v1179_v51  ;;  %v1823_v51 = vld [vmem:[%s1922_s21 + $0xf8] sm:$0xff] }
  0xd4   : > { %v997_v52 = vpop.f32.mrf.mxu2  ;;  %v1077_v53 = vpop.f32.mrf.mxu3 }
  0xd5   : > { %v1211_v56 = vpack.c.bf16 %v997_v52, %v997_v52  ;;  %v1243_v57 = vpack.c.bf16 %v1077_v53, %v1077_v53  ;;  %v840_v58 = vpop.f32.mrf.mxu0  ;;  %v920_v59 = vpop.f32.mrf.mxu1 }
  0xd6   : > { %v1148_v62 = vpack.c.bf16 %v840_v58, %v840_v58  ;;  %v1180_v63 = vpack.c.bf16 %v920_v59, %v920_v59 }
  0xd7   : > { %1340 = vst.msk [vmem:[%s1995_s24 + $0x11c] sm:$0xf] %vm1268_vm3, %v1211_v56  ;;  %v1839_v56 = vld [vmem:[%s1922_s21 + $0x178] sm:$0xff] }
  0xd8   : > { %1372 = vst.msk [vmem:[%s1995_s24 + $0x19c] sm:$0xf] %vm1268_vm3, %v1243_v57  ;;  %1738 = vmatmul.msk.bf16.gmra.mxu0 %vm611_vm2, %v1804_v54  ;;  %1754 = vmatmul.msk.bf16.gmra.mxu1 %vm611_vm2, %v1820_v55  ;;  %v1855_v57 = vld [vmem:[%s1922_s21 + $0x1f8] sm:$0xff] }
  0xd9   : > { %1277 = vst.msk [vmem:[%s1995_s24 + $0x20] sm:$0xf] %vm1268_vm3, %v1148_v62  ;;  %1770 = vmatmul.msk.bf16.gmra.mxu2 %vm611_vm2, %v1836_v60  ;;  %1786 = vmatmul.msk.bf16.gmra.mxu3 %vm611_vm2, %v1852_v61 }
  0xda   : > { %1309 = vst.msk [vmem:[%s1995_s24 + $0xa0] sm:$0xf] %vm1268_vm3, %v1180_v63 }
  0xdc   : > { %v1000_v0 = vpop.f32.mrf.mxu2  ;;  %v1080_v1 = vpop.f32.mrf.mxu3 }
  0xdd   : > { %v1212_v2 = vpack.c.bf16 %v1000_v0, %v1000_v0  ;;  %v1244_v3 = vpack.c.bf16 %v1080_v1, %v1080_v1  ;;  %v842_v4 = vpop.f32.mrf.mxu0  ;;  %v922_v5 = vpop.f32.mrf.mxu1 }
  0xde   : > { %v1149_v6 = vpack.c.bf16 %v842_v4, %v842_v4  ;;  %v1181_v7 = vpack.c.bf16 %v922_v5, %v922_v5 }
  0xdf   : > { %1341 = vst.msk [vmem:[%s1995_s24 + $0x120] sm:$0xf] %vm1268_vm3, %v1212_v2 }
  0xe0   : > { %1373 = vst.msk [vmem:[%s1995_s24 + $0x1a0] sm:$0xf] %vm1268_vm3, %v1244_v3 }
  0xe1   : > { %1278 = vst.msk [vmem:[%s1995_s24 + $0x24] sm:$0xf] %vm1268_vm3, %v1149_v6 }
  0xe2   : > { %1310 = vst.msk [vmem:[%s1995_s24 + $0xa4] sm:$0xf] %vm1268_vm3, %v1181_v7 }
  0xe4   : > { %v1002_v8 = vpop.f32.mrf.mxu2  ;;  %v1082_v9 = vpop.f32.mrf.mxu3 }
  0xe5   : > { %v1213_v12 = vpack.c.bf16 %v1002_v8, %v1002_v8  ;;  %v1245_v13 = vpack.c.bf16 %v1082_v9, %v1082_v9  ;;  %v845_v14 = vpop.f32.mrf.mxu0  ;;  %v925_v15 = vpop.f32.mrf.mxu1 }
  0xe6   : > { %v1150_v18 = vpack.c.bf16 %v845_v14, %v845_v14  ;;  %v1182_v19 = vpack.c.bf16 %v925_v15, %v925_v15 }
  0xe7   : > { %1342 = vst.msk [vmem:[%s1995_s24 + $0x124] sm:$0xf] %vm1268_vm3, %v1213_v12 }
  0xe8   : > { %1374 = vst.msk [vmem:[%s1995_s24 + $0x1a4] sm:$0xf] %vm1268_vm3, %v1245_v13  ;;  %1739 = vmatmul.msk.bf16.gmra.mxu0 %vm611_vm2, %v1805_v10  ;;  %1755 = vmatmul.msk.bf16.gmra.mxu1 %vm611_vm2, %v1821_v11 }
  0xe9   : > { %1279 = vst.msk [vmem:[%s1995_s24 + $0x28] sm:$0xf] %vm1268_vm3, %v1150_v18  ;;  %1771 = vmatmul.msk.bf16.gmra.mxu2 %vm611_vm2, %v1837_v16  ;;  %1787 = vmatmul.msk.bf16.gmra.mxu3 %vm611_vm2, %v1853_v17 }
  0xea   : > { %1311 = vst.msk [vmem:[%s1995_s24 + $0xa8] sm:$0xf] %vm1268_vm3, %v1182_v19 }
  0xec   : > { %v1005_v20 = vpop.f32.mrf.mxu2  ;;  %v1085_v21 = vpop.f32.mrf.mxu3 }
  0xed   : > { %v1214_v22 = vpack.c.bf16 %v1005_v20, %v1005_v20  ;;  %v1246_v23 = vpack.c.bf16 %v1085_v21, %v1085_v21  ;;  %v847_v24 = vpop.f32.mrf.mxu0  ;;  %v927_v25 = vpop.f32.mrf.mxu1 }
  0xee   : > { %v1151_v26 = vpack.c.bf16 %v847_v24, %v847_v24  ;;  %v1183_v27 = vpack.c.bf16 %v927_v25, %v927_v25 }
  0xef   : > { %1343 = vst.msk [vmem:[%s1995_s24 + $0x128] sm:$0xf] %vm1268_vm3, %v1214_v22 }
  0xf0   : > { %1375 = vst.msk [vmem:[%s1995_s24 + $0x1a8] sm:$0xf] %vm1268_vm3, %v1246_v23 }
  0xf1   : > { %1280 = vst.msk [vmem:[%s1995_s24 + $0x2c] sm:$0xf] %vm1268_vm3, %v1151_v26 }
  0xf2   : > { %1312 = vst.msk [vmem:[%s1995_s24 + $0xac] sm:$0xf] %vm1268_vm3, %v1183_v27 }
  0xf4   : > { %v1007_v28 = vpop.f32.mrf.mxu2  ;;  %v1087_v29 = vpop.f32.mrf.mxu3 }
  0xf5   : > { %v1215_v32 = vpack.c.bf16 %v1007_v28, %v1007_v28  ;;  %v1247_v33 = vpack.c.bf16 %v1087_v29, %v1087_v29  ;;  %v850_v34 = vpop.f32.mrf.mxu0  ;;  %v930_v35 = vpop.f32.mrf.mxu1 }
  0xf6   : > { %v1152_v38 = vpack.c.bf16 %v850_v34, %v850_v34  ;;  %v1184_v39 = vpack.c.bf16 %v930_v35, %v930_v35 }
  0xf7   : > { %1344 = vst.msk [vmem:[%s1995_s24 + $0x12c] sm:$0xf] %vm1268_vm3, %v1215_v32 }
  0xf8   : > { %1376 = vst.msk [vmem:[%s1995_s24 + $0x1ac] sm:$0xf] %vm1268_vm3, %v1247_v33  ;;  %1740 = vmatmul.msk.bf16.gmra.mxu0 %vm611_vm2, %v1806_v30  ;;  %1756 = vmatmul.msk.bf16.gmra.mxu1 %vm611_vm2, %v1822_v31 }
  0xf9   : > { %1281 = vst.msk [vmem:[%s1995_s24 + $0x30] sm:$0xf] %vm1268_vm3, %v1152_v38  ;;  %1772 = vmatmul.msk.bf16.gmra.mxu2 %vm611_vm2, %v1838_v36  ;;  %1788 = vmatmul.msk.bf16.gmra.mxu3 %vm611_vm2, %v1854_v37 }
  0xfa   : > { %1313 = vst.msk [vmem:[%s1995_s24 + $0xb0] sm:$0xf] %vm1268_vm3, %v1184_v39 }
  0xfc   : > { %v1010_v40 = vpop.f32.mrf.mxu2  ;;  %v1090_v41 = vpop.f32.mrf.mxu3 }
  0xfd   : > { %v1216_v42 = vpack.c.bf16 %v1010_v40, %v1010_v40  ;;  %v1248_v43 = vpack.c.bf16 %v1090_v41, %v1090_v41  ;;  %v852_v44 = vpop.f32.mrf.mxu0  ;;  %v932_v45 = vpop.f32.mrf.mxu1 }
  0xfe   : > { %v1153_v46 = vpack.c.bf16 %v852_v44, %v852_v44  ;;  %v1185_v47 = vpack.c.bf16 %v932_v45, %v932_v45 }
  0xff   : > { %1345 = vst.msk [vmem:[%s1995_s24 + $0x130] sm:$0xf] %vm1268_vm3, %v1216_v42 }
 0x100   : > { %1377 = vst.msk [vmem:[%s1995_s24 + $0x1b0] sm:$0xf] %vm1268_vm3, %v1248_v43 }
 0x101   : > { %1282 = vst.msk [vmem:[%s1995_s24 + $0x34] sm:$0xf] %vm1268_vm3, %v1153_v46 }
 0x102   : > { %1314 = vst.msk [vmem:[%s1995_s24 + $0xb4] sm:$0xf] %vm1268_vm3, %v1185_v47 }
 0x104   : > { %v1012_v48 = vpop.f32.mrf.mxu2  ;;  %v1092_v49 = vpop.f32.mrf.mxu3 }
 0x105   : > { %v1217_v52 = vpack.c.bf16 %v1012_v48, %v1012_v48  ;;  %v1249_v53 = vpack.c.bf16 %v1092_v49, %v1092_v49  ;;  %v855_v54 = vpop.f32.mrf.mxu0  ;;  %v935_v55 = vpop.f32.mrf.mxu1 }
 0x106   : > { %v1154_v58 = vpack.c.bf16 %v855_v54, %v855_v54  ;;  %v1186_v59 = vpack.c.bf16 %v935_v55, %v935_v55 }
 0x107   : > { %1346 = vst.msk [vmem:[%s1995_s24 + $0x134] sm:$0xf] %vm1268_vm3, %v1217_v52 }
 0x108   : > { %1378 = vst.msk [vmem:[%s1995_s24 + $0x1b4] sm:$0xf] %vm1268_vm3, %v1249_v53  ;;  %1741 = vmatmul.msk.bf16.gmra.mxu0 %vm611_vm2, %v1807_v50  ;;  %1757 = vmatmul.msk.bf16.gmra.mxu1 %vm611_vm2, %v1823_v51 }
 0x109   : > { %1283 = vst.msk [vmem:[%s1995_s24 + $0x38] sm:$0xf] %vm1268_vm3, %v1154_v58  ;;  %1773 = vmatmul.msk.bf16.gmra.mxu2 %vm611_vm2, %v1839_v56  ;;  %1789 = vmatmul.msk.bf16.gmra.mxu3 %vm611_vm2, %v1855_v57 }
 0x10a   : > { %1315 = vst.msk [vmem:[%s1995_s24 + $0xb8] sm:$0xf] %vm1268_vm3, %v1186_v59 }
 0x10c   : > { %v1015_v60 = vpop.f32.mrf.mxu2  ;;  %v1095_v61 = vpop.f32.mrf.mxu3 }
 0x10d   : > { %v1218_v62 = vpack.c.bf16 %v1015_v60, %v1015_v60  ;;  %v1250_v63 = vpack.c.bf16 %v1095_v61, %v1095_v61  ;;  %v857_v0 = vpop.f32.mrf.mxu0  ;;  %v937_v1 = vpop.f32.mrf.mxu1 }
 0x10e   : > { %v1155_v2 = vpack.c.bf16 %v857_v0, %v857_v0  ;;  %v1187_v3 = vpack.c.bf16 %v937_v1, %v937_v1 }
 0x10f   : > { %1347 = vst.msk [vmem:[%s1995_s24 + $0x138] sm:$0xf] %vm1268_vm3, %v1218_v62 }
 0x110   : > { %1379 = vst.msk [vmem:[%s1995_s24 + $0x1b8] sm:$0xf] %vm1268_vm3, %v1250_v63 }
 0x111   : > { %1284 = vst.msk [vmem:[%s1995_s24 + $0x3c] sm:$0xf] %vm1268_vm3, %v1155_v2 }
 0x112   : > { %1316 = vst.msk [vmem:[%s1995_s24 + $0xbc] sm:$0xf] %vm1268_vm3, %v1187_v3 }
 0x114   : > { %v1017_v4 = vpop.f32.mrf.mxu2  ;;  %v1097_v5 = vpop.f32.mrf.mxu3 }
 0x115   : > { %v1219_v6 = vpack.c.bf16 %v1017_v4, %v1017_v4  ;;  %v1251_v7 = vpack.c.bf16 %v1097_v5, %v1097_v5  ;;  %v860_v8 = vpop.f32.mrf.mxu0  ;;  %v940_v9 = vpop.f32.mrf.mxu1 }
 0x116   : > { %v1156_v10 = vpack.c.bf16 %v860_v8, %v860_v8  ;;  %v1188_v11 = vpack.c.bf16 %v940_v9, %v940_v9 }
 0x117   : > { %1348 = vst.msk [vmem:[%s1995_s24 + $0x13c] sm:$0xf] %vm1268_vm3, %v1219_v6 }
 0x118   : > { %1380 = vst.msk [vmem:[%s1995_s24 + $0x1bc] sm:$0xf] %vm1268_vm3, %v1251_v7 }
 0x119   : > { %1285 = vst.msk [vmem:[%s1995_s24 + $0x40] sm:$0xf] %vm1268_vm3, %v1156_v10 }
 0x11a   : > { %1317 = vst.msk [vmem:[%s1995_s24 + $0xc0] sm:$0xf] %vm1268_vm3, %v1188_v11 }
 0x11c   : > { %v1020_v12 = vpop.f32.mrf.mxu2  ;;  %v1100_v13 = vpop.f32.mrf.mxu3 }
 0x11d   : > { %v1220_v14 = vpack.c.bf16 %v1020_v12, %v1020_v12  ;;  %v1252_v15 = vpack.c.bf16 %v1100_v13, %v1100_v13  ;;  %v862_v16 = vpop.f32.mrf.mxu0  ;;  %v942_v17 = vpop.f32.mrf.mxu1 }
 0x11e   : > { %v1157_v18 = vpack.c.bf16 %v862_v16, %v862_v16  ;;  %v1189_v19 = vpack.c.bf16 %v942_v17, %v942_v17 }
 0x11f   : > { %1349 = vst.msk [vmem:[%s1995_s24 + $0x140] sm:$0xf] %vm1268_vm3, %v1220_v14 }
 0x120   : > { %1381 = vst.msk [vmem:[%s1995_s24 + $0x1c0] sm:$0xf] %vm1268_vm3, %v1252_v15 }
 0x121   : > { %1286 = vst.msk [vmem:[%s1995_s24 + $0x44] sm:$0xf] %vm1268_vm3, %v1157_v18 }
 0x122   : > { %1318 = vst.msk [vmem:[%s1995_s24 + $0xc4] sm:$0xf] %vm1268_vm3, %v1189_v19 }
 0x124   : > { %v1022_v20 = vpop.f32.mrf.mxu2  ;;  %v1102_v21 = vpop.f32.mrf.mxu3 }
 0x125   : > { %v1221_v22 = vpack.c.bf16 %v1022_v20, %v1022_v20  ;;  %v1253_v23 = vpack.c.bf16 %v1102_v21, %v1102_v21  ;;  %v865_v24 = vpop.f32.mrf.mxu0  ;;  %v945_v25 = vpop.f32.mrf.mxu1 }
 0x126   : > { %v1158_v26 = vpack.c.bf16 %v865_v24, %v865_v24  ;;  %v1190_v27 = vpack.c.bf16 %v945_v25, %v945_v25 }
 0x127   : > { %1350 = vst.msk [vmem:[%s1995_s24 + $0x144] sm:$0xf] %vm1268_vm3, %v1221_v22 }
 0x128   : > { %1382 = vst.msk [vmem:[%s1995_s24 + $0x1c4] sm:$0xf] %vm1268_vm3, %v1253_v23 }
 0x129   : > { %1287 = vst.msk [vmem:[%s1995_s24 + $0x48] sm:$0xf] %vm1268_vm3, %v1158_v26 }
 0x12a   : > { %1319 = vst.msk [vmem:[%s1995_s24 + $0xc8] sm:$0xf] %vm1268_vm3, %v1190_v27 }
 0x12c   : > { %v1025_v28 = vpop.f32.mrf.mxu2  ;;  %v1105_v29 = vpop.f32.mrf.mxu3 }
 0x12d   : > { %v1222_v30 = vpack.c.bf16 %v1025_v28, %v1025_v28  ;;  %v1254_v31 = vpack.c.bf16 %v1105_v29, %v1105_v29  ;;  %v867_v32 = vpop.f32.mrf.mxu0  ;;  %v947_v33 = vpop.f32.mrf.mxu1 }
 0x12e   : > { %v1159_v34 = vpack.c.bf16 %v867_v32, %v867_v32  ;;  %v1191_v35 = vpack.c.bf16 %v947_v33, %v947_v33 }
 0x12f   : > { %1351 = vst.msk [vmem:[%s1995_s24 + $0x148] sm:$0xf] %vm1268_vm3, %v1222_v30 }
 0x130   : > { %1383 = vst.msk [vmem:[%s1995_s24 + $0x1c8] sm:$0xf] %vm1268_vm3, %v1254_v31 }
 0x131   : > { %1288 = vst.msk [vmem:[%s1995_s24 + $0x4c] sm:$0xf] %vm1268_vm3, %v1159_v34 }
 0x132   : > { %1320 = vst.msk [vmem:[%s1995_s24 + $0xcc] sm:$0xf] %vm1268_vm3, %v1191_v35 }
 0x134   : > { %v1027_v36 = vpop.f32.mrf.mxu2  ;;  %v1107_v37 = vpop.f32.mrf.mxu3 }
 0x135   : > { %v1223_v38 = vpack.c.bf16 %v1027_v36, %v1027_v36  ;;  %v1255_v39 = vpack.c.bf16 %v1107_v37, %v1107_v37  ;;  %v870_v40 = vpop.f32.mrf.mxu0  ;;  %v950_v41 = vpop.f32.mrf.mxu1 }
 0x136   : > { %v1160_v42 = vpack.c.bf16 %v870_v40, %v870_v40  ;;  %v1192_v43 = vpack.c.bf16 %v950_v41, %v950_v41 }
 0x137   : > { %1352 = vst.msk [vmem:[%s1995_s24 + $0x14c] sm:$0xf] %vm1268_vm3, %v1223_v38 }
 0x138   : > { %1384 = vst.msk [vmem:[%s1995_s24 + $0x1cc] sm:$0xf] %vm1268_vm3, %v1255_v39 }
 0x139   : > { %1289 = vst.msk [vmem:[%s1995_s24 + $0x50] sm:$0xf] %vm1268_vm3, %v1160_v42 }
 0x13a   : > { %1321 = vst.msk [vmem:[%s1995_s24 + $0xd0] sm:$0xf] %vm1268_vm3, %v1192_v43 }
 0x13c   : > { %v1030_v44 = vpop.f32.mrf.mxu2  ;;  %v1110_v45 = vpop.f32.mrf.mxu3 }
 0x13d   : > { %v1224_v46 = vpack.c.bf16 %v1030_v44, %v1030_v44  ;;  %v1256_v47 = vpack.c.bf16 %v1110_v45, %v1110_v45  ;;  %v872_v48 = vpop.f32.mrf.mxu0  ;;  %v952_v49 = vpop.f32.mrf.mxu1 }
 0x13e   : > { %v1161_v50 = vpack.c.bf16 %v872_v48, %v872_v48  ;;  %v1193_v51 = vpack.c.bf16 %v952_v49, %v952_v49 }
 0x13f   : > { %1353 = vst.msk [vmem:[%s1995_s24 + $0x150] sm:$0xf] %vm1268_vm3, %v1224_v46 }
 0x140   : > { %1385 = vst.msk [vmem:[%s1995_s24 + $0x1d0] sm:$0xf] %vm1268_vm3, %v1256_v47 }
 0x141   : > { %1290 = vst.msk [vmem:[%s1995_s24 + $0x54] sm:$0xf] %vm1268_vm3, %v1161_v50 }
 0x142   : > { %1322 = vst.msk [vmem:[%s1995_s24 + $0xd4] sm:$0xf] %vm1268_vm3, %v1193_v51 }
 0x144   : > { %v1032_v52 = vpop.f32.mrf.mxu2  ;;  %v1112_v53 = vpop.f32.mrf.mxu3 }
 0x145   : > { %v1225_v54 = vpack.c.bf16 %v1032_v52, %v1032_v52  ;;  %v1257_v55 = vpack.c.bf16 %v1112_v53, %v1112_v53  ;;  %v875_v56 = vpop.f32.mrf.mxu0  ;;  %v955_v57 = vpop.f32.mrf.mxu1 }
 0x146   : > { %v1162_v58 = vpack.c.bf16 %v875_v56, %v875_v56  ;;  %v1194_v59 = vpack.c.bf16 %v955_v57, %v955_v57 }
 0x147   : > { %1354 = vst.msk [vmem:[%s1995_s24 + $0x154] sm:$0xf] %vm1268_vm3, %v1225_v54 }
 0x148   : > { %1386 = vst.msk [vmem:[%s1995_s24 + $0x1d4] sm:$0xf] %vm1268_vm3, %v1257_v55 }
 0x149   : > { %1291 = vst.msk [vmem:[%s1995_s24 + $0x58] sm:$0xf] %vm1268_vm3, %v1162_v58 }
 0x14a   : > { %1323 = vst.msk [vmem:[%s1995_s24 + $0xd8] sm:$0xf] %vm1268_vm3, %v1194_v59 }
 0x14c   : > { %v1035_v60 = vpop.f32.mrf.mxu2  ;;  %v1115_v61 = vpop.f32.mrf.mxu3 }
 0x14d   : > { %v1226_v62 = vpack.c.bf16 %v1035_v60, %v1035_v60  ;;  %v1258_v63 = vpack.c.bf16 %v1115_v61, %v1115_v61  ;;  %v877_v0 = vpop.f32.mrf.mxu0  ;;  %v957_v1 = vpop.f32.mrf.mxu1 }
 0x14e   : > { %v1163_v2 = vpack.c.bf16 %v877_v0, %v877_v0  ;;  %v1195_v3 = vpack.c.bf16 %v957_v1, %v957_v1 }
 0x14f   : > { %1355 = vst.msk [vmem:[%s1995_s24 + $0x158] sm:$0xf] %vm1268_vm3, %v1226_v62 }
 0x150   : > { %1387 = vst.msk [vmem:[%s1995_s24 + $0x1d8] sm:$0xf] %vm1268_vm3, %v1258_v63 }
 0x151   : > { %1292 = vst.msk [vmem:[%s1995_s24 + $0x5c] sm:$0xf] %vm1268_vm3, %v1163_v2 }
 0x152   : > { %1324 = vst.msk [vmem:[%s1995_s24 + $0xdc] sm:$0xf] %vm1268_vm3, %v1195_v3 }
 0x154   : > { %v1037_v4 = vpop.f32.mrf.mxu2  ;;  %v1117_v5 = vpop.f32.mrf.mxu3 }
 0x155   : > { %v1227_v6 = vpack.c.bf16 %v1037_v4, %v1037_v4  ;;  %v1259_v7 = vpack.c.bf16 %v1117_v5, %v1117_v5  ;;  %v880_v8 = vpop.f32.mrf.mxu0  ;;  %v960_v9 = vpop.f32.mrf.mxu1 }
 0x156   : > { %v1164_v10 = vpack.c.bf16 %v880_v8, %v880_v8  ;;  %v1196_v11 = vpack.c.bf16 %v960_v9, %v960_v9 }
 0x157   : > { %1356 = vst.msk [vmem:[%s1995_s24 + $0x15c] sm:$0xf] %vm1268_vm3, %v1227_v6 }
 0x158   : > { %1388 = vst.msk [vmem:[%s1995_s24 + $0x1dc] sm:$0xf] %vm1268_vm3, %v1259_v7 }
 0x159   : > { %1293 = vst.msk [vmem:[%s1995_s24 + $0x60] sm:$0xf] %vm1268_vm3, %v1164_v10 }
 0x15a   : > { %1325 = vst.msk [vmem:[%s1995_s24 + $0xe0] sm:$0xf] %vm1268_vm3, %v1196_v11 }
 0x15c   : > { %v1040_v12 = vpop.f32.mrf.mxu2  ;;  %v1120_v13 = vpop.f32.mrf.mxu3 }
 0x15d   : > { %v1228_v14 = vpack.c.bf16 %v1040_v12, %v1040_v12  ;;  %v1260_v15 = vpack.c.bf16 %v1120_v13, %v1120_v13  ;;  %v882_v16 = vpop.f32.mrf.mxu0  ;;  %v962_v17 = vpop.f32.mrf.mxu1 }
 0x15e   : > { %v1165_v18 = vpack.c.bf16 %v882_v16, %v882_v16  ;;  %v1197_v19 = vpack.c.bf16 %v962_v17, %v962_v17 }
 0x15f   : > { %1357 = vst.msk [vmem:[%s1995_s24 + $0x160] sm:$0xf] %vm1268_vm3, %v1228_v14 }
 0x160   : > { %1389 = vst.msk [vmem:[%s1995_s24 + $0x1e0] sm:$0xf] %vm1268_vm3, %v1260_v15 }
 0x161   : > { %1294 = vst.msk [vmem:[%s1995_s24 + $0x64] sm:$0xf] %vm1268_vm3, %v1165_v18 }
 0x162   : > { %1326 = vst.msk [vmem:[%s1995_s24 + $0xe4] sm:$0xf] %vm1268_vm3, %v1197_v19 }
 0x164   : > { %v1042_v20 = vpop.f32.mrf.mxu2  ;;  %v1122_v21 = vpop.f32.mrf.mxu3 }
 0x165   : > { %v1229_v22 = vpack.c.bf16 %v1042_v20, %v1042_v20  ;;  %v1261_v23 = vpack.c.bf16 %v1122_v21, %v1122_v21  ;;  %v885_v24 = vpop.f32.mrf.mxu0  ;;  %v965_v25 = vpop.f32.mrf.mxu1 }
 0x166   : > { %v1166_v26 = vpack.c.bf16 %v885_v24, %v885_v24  ;;  %v1198_v27 = vpack.c.bf16 %v965_v25, %v965_v25 }
 0x167   : > { %1358 = vst.msk [vmem:[%s1995_s24 + $0x164] sm:$0xf] %vm1268_vm3, %v1229_v22 }
 0x168   : > { %1390 = vst.msk [vmem:[%s1995_s24 + $0x1e4] sm:$0xf] %vm1268_vm3, %v1261_v23 }
 0x169   : > { %1295 = vst.msk [vmem:[%s1995_s24 + $0x68] sm:$0xf] %vm1268_vm3, %v1166_v26 }
 0x16a   : > { %1327 = vst.msk [vmem:[%s1995_s24 + $0xe8] sm:$0xf] %vm1268_vm3, %v1198_v27 }
 0x16c   : > { %v1045_v28 = vpop.f32.mrf.mxu2  ;;  %v1125_v29 = vpop.f32.mrf.mxu3 }
 0x16d   : > { %v1230_v30 = vpack.c.bf16 %v1045_v28, %v1045_v28  ;;  %v1262_v31 = vpack.c.bf16 %v1125_v29, %v1125_v29  ;;  %v887_v32 = vpop.f32.mrf.mxu0  ;;  %v967_v33 = vpop.f32.mrf.mxu1 }
 0x16e   : > { %v1167_v34 = vpack.c.bf16 %v887_v32, %v887_v32  ;;  %v1199_v35 = vpack.c.bf16 %v967_v33, %v967_v33 }
 0x16f   : > { %1359 = vst.msk [vmem:[%s1995_s24 + $0x168] sm:$0xf] %vm1268_vm3, %v1230_v30 }
 0x170   : > { %1391 = vst.msk [vmem:[%s1995_s24 + $0x1e8] sm:$0xf] %vm1268_vm3, %v1262_v31 }
 0x171   : > { %1296 = vst.msk [vmem:[%s1995_s24 + $0x6c] sm:$0xf] %vm1268_vm3, %v1167_v34 }
 0x172   : > { %1328 = vst.msk [vmem:[%s1995_s24 + $0xec] sm:$0xf] %vm1268_vm3, %v1199_v35 }
 0x174   : > { %v1047_v36 = vpop.f32.mrf.mxu2  ;;  %v1127_v37 = vpop.f32.mrf.mxu3 }
 0x175   : > { %v1231_v38 = vpack.c.bf16 %v1047_v36, %v1047_v36  ;;  %v1263_v39 = vpack.c.bf16 %v1127_v37, %v1127_v37  ;;  %v890_v40 = vpop.f32.mrf.mxu0  ;;  %v970_v41 = vpop.f32.mrf.mxu1 }
 0x176   : > { %v1168_v42 = vpack.c.bf16 %v890_v40, %v890_v40  ;;  %v1200_v43 = vpack.c.bf16 %v970_v41, %v970_v41 }
 0x177   : > { %1360 = vst.msk [vmem:[%s1995_s24 + $0x16c] sm:$0xf] %vm1268_vm3, %v1231_v38 }
 0x178   : > { %1392 = vst.msk [vmem:[%s1995_s24 + $0x1ec] sm:$0xf] %vm1268_vm3, %v1263_v39 }
 0x179   : > { %1297 = vst.msk [vmem:[%s1995_s24 + $0x70] sm:$0xf] %vm1268_vm3, %v1168_v42 }
 0x17a   : > { %1329 = vst.msk [vmem:[%s1995_s24 + $0xf0] sm:$0xf] %vm1268_vm3, %v1200_v43 }
 0x17c   : > { %v1050_v44 = vpop.f32.mrf.mxu2  ;;  %v1130_v45 = vpop.f32.mrf.mxu3 }
 0x17d   : > { %v1232_v46 = vpack.c.bf16 %v1050_v44, %v1050_v44  ;;  %v1264_v47 = vpack.c.bf16 %v1130_v45, %v1130_v45  ;;  %v892_v48 = vpop.f32.mrf.mxu0  ;;  %v972_v49 = vpop.f32.mrf.mxu1 }
 0x17e   : > { %v1169_v50 = vpack.c.bf16 %v892_v48, %v892_v48  ;;  %v1201_v51 = vpack.c.bf16 %v972_v49, %v972_v49 }
 0x17f   : > { %1361 = vst.msk [vmem:[%s1995_s24 + $0x170] sm:$0xf] %vm1268_vm3, %v1232_v46 }
 0x180   : > { %1393 = vst.msk [vmem:[%s1995_s24 + $0x1f0] sm:$0xf] %vm1268_vm3, %v1264_v47 }
 0x181   : > { %1298 = vst.msk [vmem:[%s1995_s24 + $0x74] sm:$0xf] %vm1268_vm3, %v1169_v50 }
 0x182   : > { %1330 = vst.msk [vmem:[%s1995_s24 + $0xf4] sm:$0xf] %vm1268_vm3, %v1201_v51 }
 0x184   : > { %v1052_v52 = vpop.f32.mrf.mxu2  ;;  %v1132_v53 = vpop.f32.mrf.mxu3 }
 0x185   : > { %v1233_v54 = vpack.c.bf16 %v1052_v52, %v1052_v52  ;;  %v1265_v55 = vpack.c.bf16 %v1132_v53, %v1132_v53  ;;  %v895_v56 = vpop.f32.mrf.mxu0  ;;  %v975_v57 = vpop.f32.mrf.mxu1 }
 0x186   : > { %v1170_v58 = vpack.c.bf16 %v895_v56, %v895_v56  ;;  %v1202_v59 = vpack.c.bf16 %v975_v57, %v975_v57 }
 0x187   : > { %1362 = vst.msk [vmem:[%s1995_s24 + $0x174] sm:$0xf] %vm1268_vm3, %v1233_v54 }
 0x188   : > { %1394 = vst.msk [vmem:[%s1995_s24 + $0x1f4] sm:$0xf] %vm1268_vm3, %v1265_v55 }
 0x189   : > { %1299 = vst.msk [vmem:[%s1995_s24 + $0x78] sm:$0xf] %vm1268_vm3, %v1170_v58 }
 0x18a   : > { %1331 = vst.msk [vmem:[%s1995_s24 + $0xf8] sm:$0xf] %vm1268_vm3, %v1202_v59 }
 0x18c   : > { %v1055_v60 = vpop.f32.mrf.mxu2  ;;  %v1135_v61 = vpop.f32.mrf.mxu3 }
 0x18d   : > { %v1234_v62 = vpack.c.bf16 %v1055_v60, %v1055_v60  ;;  %v1266_v63 = vpack.c.bf16 %v1135_v61, %v1135_v61  ;;  %v897_v0 = vpop.f32.mrf.mxu0  ;;  %v977_v1 = vpop.f32.mrf.mxu1 }
 0x18e   : > { %v1171_v2 = vpack.c.bf16 %v897_v0, %v897_v0  ;;  %v1203_v3 = vpack.c.bf16 %v977_v1, %v977_v1 }
 0x18f   : > { %1363 = vst.msk [vmem:[%s1995_s24 + $0x178] sm:$0xf] %vm1268_vm3, %v1234_v62 }
 0x190   : > { %1395 = vst.msk [vmem:[%s1995_s24 + $0x1f8] sm:$0xf] %vm1268_vm3, %v1266_v63 }
 0x191   : > { %1300 = vst.msk [vmem:[%s1995_s24 + $0x7c] sm:$0xf] %vm1268_vm3, %v1171_v2 }
 0x192   : > { %1332 = vst.msk [vmem:[%s1995_s24 + $0xfc] sm:$0xf] %vm1268_vm3, %v1203_v3 }
 0x194   : > { %v1057_v4 = vpop.f32.mrf.mxu2  ;;  %v1137_v5 = vpop.f32.mrf.mxu3 }
 0x195   : > { %v1235_v6 = vpack.c.bf16 %v1057_v4, %v1057_v4  ;;  %v1267_v7 = vpack.c.bf16 %v1137_v5, %v1137_v5 }
 0x197   : > { %1364 = vst.msk [vmem:[%s1995_s24 + $0x17c] sm:$0xf] %vm1268_vm3, %v1235_v6 }
 0x198   : > { %1396 = vst.msk [vmem:[%s1995_s24 + $0x1fc] sm:$0xf] %vm1268_vm3, %v1267_v7 }
 0x199 PF: > { %s12_s9 = sadd.s32 1, %s1879_s9  }
 0x19a   : > { %p9_p4 = scmp.ge.s32.totalorder %s12_s9, 18  }
 0x19c   :  { %11 = sbr.rel (!%p9_p4) target bundleno = 1 (0x1), region = 58 }

</bundles_post_ra>
